<compile_context>
chip_gen: v6e
topology: v6e:2x2x1
jax: 0.10.0
libtpu: 0.0.40
codegen_flags: <defaults>
</compile_context>

<pallas_src>
import jax
import jax.numpy as jnp
import numpy as np
from jax.experimental import pallas as pl
from jax.experimental.pallas import tpu as pltpu

# ----- config (mirrors UcTriCT(fbase='tlr', renorm=True), eval mode) -----
B, C_IN, H, W = 2, 4, 16, 16
C_CONV = 32          # synthetic backbone conv width
FEAT_DIM = 32        # global feature dim
TAYLOR_N = 5         # UCBase.taylor_n (fbase='tlr' -> odd=2 -> uc_k has 5 entries, odd powers)
BN_EPS = 1e-5        # torch.nn.BatchNorm1d default eps
NORM_EPS = 1e-12     # torch F.normalize default eps
HW = H * W
K_IM2COL = C_IN * 9  # 36 -- fed at its true width (Mosaic pads lanes internally)

CP = 128             # conv width 32 -> 128 lanes (lane-dense matmul / stores)
FP = 128             # feat dim   32 -> 128 lanes
UC_LANE = FEAT_DIM   # uc packed into lane 32 of the (B, 128) feat output slab


# --------------------------- Pallas kernel ---------------------------

def fused_kernel(scal_ref, uck_ref,                         # SMEM scalar params
                 patches_ref, wconv_ref, wfc_ref, vec_ref,  # VMEM inputs
                 out_ref):                                  # (B, FP) output slab
    """Single-invocation fused forward: conv-as-matmul + ReLU + GAP + FC + uc head + neck."""
    # ---- backbone: conv3x3 as one (B*HW, K)@(K, CP) bf16 MXU matmul, f32 accumulation ----
    y = jnp.dot(patches_ref[...], wconv_ref[...], preferred_element_type=jnp.float32)
    y = jnp.maximum(y + vec_ref[0:1, :], 0.0)                      # + conv bias, ReLU (f32)

    # ---- global average pool: per-batch sublane reduction on tile-aligned static slices ----
    pooled = jnp.concatenate(
        [jnp.sum(y[b * HW:(b + 1) * HW, :], axis=0, keepdims=True) for b in range(B)],
        axis=0) * (1.0 / HW)                                       # (B, CP) f32

    # ---- global_feat = pooled @ fc_w.T + fc_b (kept f32; negligible MXU work) ----
    gf = jnp.dot(pooled, wfc_ref[...], preferred_element_type=jnp.float32) + vec_ref[1:2, :]
    f_norm = jnp.sqrt(jnp.sum(gf * gf, axis=-1, keepdims=True))    # ||global_feat|| (B, 1)

    # ---- UCBase.get_uc (eval): BatchNorm1d(1) on the norm, odd Taylor (Horner), - avg_uc ----
    x = (f_norm - scal_ref[0]) * scal_ref[1]                       # (f_norm - rm) / sqrt(rv+eps)
    x2 = x * x
    acc = uck_ref[TAYLOR_N - 1]
    for i in range(TAYLOR_N - 2, -1, -1):                          # Horner over odd powers
        acc = acc * x2 + uck_ref[i]
    uc = x * acc - scal_ref[2]                                     # uc_r - avg_uc   (B, 1)

    # ---- bottleneck BN (eval, folded) then F.normalize(feat) * ||global_feat|| ----
    bnf = gf * vec_ref[2:3, :] + vec_ref[3:4, :]                   # padded lanes stay exactly 0
    inv_norm = jax.lax.rsqrt(jnp.maximum(jnp.sum(bnf * bnf, axis=-1, keepdims=True),
                                         NORM_EPS * NORM_EPS))
    feat = bnf * inv_norm * f_norm                                 # neck_feat='after'

    # ---- pack uc into spare lane UC_LANE of the lane-dense output slab ----
    lane = jax.lax.broadcasted_iota(jnp.int32, (B, FP), 1)
    out_ref[...] = jnp.where(lane == UC_LANE, uc, feat)


# --------------------------- JAX glue ---------------------------

def im2col(x_nchw):
    """NCHW 3x3 pad=1 stride=1 im2col -> (B*H*W, C_IN*9), K order = c*9 + (ki*3+kj)."""
    xp = jnp.pad(x_nchw, ((0, 0), (0, 0), (1, 1), (1, 1)))
    taps = []
    for ki in range(3):
        for kj in range(3):
            taps.append(xp[:, :, ki:ki + H, kj:kj + W])        # (B, C, H, W)
    p = jnp.stack(taps, axis=2)                                # (B, C, 9, H, W)
    p = jnp.transpose(p, (0, 3, 4, 1, 2))                      # (B, H, W, C, 9)
    return p.reshape(B * HW, K_IM2COL)


def init_params(key):
    ks = jax.random.split(key, 8)
    return dict(
        conv_w=jax.random.normal(ks[0], (C_CONV, C_IN, 3, 3), jnp.float32) * 0.1,  # torch (Cout,Cin,3,3)
        conv_b=jax.random.normal(ks[1], (C_CONV,), jnp.float32) * 0.01,
        fc_w=jax.random.normal(ks[2], (FEAT_DIM, C_CONV), jnp.float32) * 0.1,       # torch (out,in)
        fc_b=jax.random.normal(ks[3], (FEAT_DIM,), jnp.float32) * 0.01,
        bn_gamma=1.0 + 0.05 * jax.random.normal(ks[4], (FEAT_DIM,), jnp.float32),
        bn_beta=jnp.zeros((FEAT_DIM,), jnp.float32),     # bottleneck bias frozen at 0 (ReID baseline)
        bn_rm=0.1 * jax.random.normal(ks[5], (FEAT_DIM,), jnp.float32),
        bn_rv=1.0 + 0.1 * jax.random.uniform(ks[6], (FEAT_DIM,), jnp.float32),
        # UCBase: uc_k is zero-initialized in the module; small deterministic nonzero values
        # are used here so the Taylor path produces non-trivial output.
        uc_k=0.05 * jax.random.normal(ks[7], (TAYLOR_N,), jnp.float32),
        bn_norm_rm=3.0,     # bn_norm (BatchNorm1d(1)) running_mean buffer
        bn_norm_rv=2.0,     # bn_norm running_var buffer
        avg_uc=0.02,        # avg_uc buffer
    )


def build_kernel_inputs(params):
    # conv weight as (K, C_CONV) matmul matrix, lane-padded to CP, bf16 MXU operand
    w_mat = params['conv_w'].reshape(C_CONV, K_IM2COL).T
    wconv = (jnp.zeros((K_IM2COL, CP), jnp.float32)
             .at[:, :C_CONV].set(w_mat).astype(jnp.bfloat16))

    # fc weight as (C_CONV, FEAT_DIM), zero-padded to (CP, FP), kept f32 (tiny matmul)
    wfc = jnp.zeros((CP, FP), jnp.float32).at[:C_CONV, :FEAT_DIM].set(params['fc_w'].T)

    # eval-mode bottleneck BN folded into scale/shift (padding lanes are exact zeros)
    bn_scale = params['bn_gamma'] * jax.lax.rsqrt(params['bn_rv'] + BN_EPS)
    bn_shift = params['bn_beta'] - params['bn_rm'] * bn_scale

    # one packed (8, FP) vector-parameter slab: conv_b / fc_b / bn_scale / bn_shift
    vec = jnp.zeros((8, FP), jnp.float32)
    vec = vec.at[0, :C_CONV].set(params['conv_b'])
    vec = vec.at[1, :FEAT_DIM].set(params['fc_b'])
    vec = vec.at[2, :FEAT_DIM].set(bn_scale)
    vec = vec.at[3, :FEAT_DIM].set(bn_shift)

    # SMEM scalars: bn_norm running_mean, 1/sqrt(running_var + eps), avg_uc
    scal = jnp.stack([
        jnp.asarray(params['bn_norm_rm'], jnp.float32),
        jax.lax.rsqrt(jnp.asarray(params['bn_norm_rv'], jnp.float32) + BN_EPS),
        jnp.asarray(params['avg_uc'], jnp.float32),
    ]).astype(jnp.float32)
    uck = params['uc_k'].astype(jnp.float32)
    return wconv, wfc, vec, scal, uck


@jax.jit
def uc_tri_ct_forward(x_nchw, params):
    patches = im2col(x_nchw).astype(jnp.bfloat16)          # (B*HW, 36) bf16 MXU operand
    wconv, wfc, vec, scal, uck = build_kernel_inputs(params)

    out = pl.pallas_call(
        fused_kernel,
        out_shape=jax.ShapeDtypeStruct((B, FP), jnp.float32),
        in_specs=[
            pl.BlockSpec(memory_space=pltpu.MemorySpace.SMEM),   # scal (3,)
            pl.BlockSpec(memory_space=pltpu.MemorySpace.SMEM),   # uc_k (TAYLOR_N,)
            pl.BlockSpec(memory_space=pltpu.MemorySpace.VMEM),   # patches (B*HW, 36) bf16
            pl.BlockSpec(memory_space=pltpu.MemorySpace.VMEM),   # conv weight (36, 128) bf16
            pl.BlockSpec(memory_space=pltpu.MemorySpace.VMEM),   # fc weight (128, 128) f32
            pl.BlockSpec(memory_space=pltpu.MemorySpace.VMEM),   # packed vector params (8, 128)
        ],
        out_specs=pl.BlockSpec(memory_space=pltpu.MemorySpace.VMEM),
    )(scal, uck, patches, wconv, wfc, vec)

    # (B, FEAT_DIM) feat, (B,) uc_r -- (feat, uc_r) of the eval path
    return out[:, :FEAT_DIM], out[:, UC_LANE]


def reference_forward(x_nchw, params):
    """Pure-JAX reference of the same eval-mode forward (same bf16 conv-matmul numerics)."""
    patches = im2col(x_nchw).astype(jnp.bfloat16)
    w_mat = params['conv_w'].reshape(C_CONV, K_IM2COL).T.astype(jnp.bfloat16)
    y = jnp.dot(patches, w_mat, preferred_element_type=jnp.float32) + params['conv_b'][None, :]
    y = jnp.maximum(y, 0.0)
    pooled = y.reshape(B, HW, C_CONV).sum(axis=1) * (1.0 / HW)
    gf = pooled @ params['fc_w'].T + params['fc_b'][None, :]
    f_norm = jnp.linalg.norm(gf, axis=-1)
    x = (f_norm - params['bn_norm_rm']) / jnp.sqrt(params['bn_norm_rv'] + BN_EPS)
    powers = jnp.stack([x ** (2 * i + 1) for i in range(TAYLOR_N)], axis=-1)
    uc_r = (params['uc_k'][None, :] * powers).sum(-1) - params['avg_uc']
    bnf = (gf - params['bn_rm'][None, :]) / jnp.sqrt(params['bn_rv'][None, :] + BN_EPS) \
        * params['bn_gamma'][None, :] + params['bn_beta'][None, :]
    feat = bnf / jnp.maximum(jnp.linalg.norm(bnf, axis=-1, keepdims=True), NORM_EPS) * f_norm[:, None]
    return feat, uc_r


if __name__ == "__main__":
    key = jax.random.PRNGKey(0)
    kx, kp = jax.random.split(key)
    x = jax.random.normal(kx, (B, C_IN, H, W), jnp.float32)   # NCHW, as in PyTorch
    params = init_params(kp)

    feat, uc = uc_tri_ct_forward(x, params)
    feat = jax.block_until_ready(feat)
    uc = jax.block_until_ready(uc)

    ref_feat, ref_uc = reference_forward(x, params)
    # Reference mirrors the bf16 conv-matmul cast, so tolerances stay tight enough to catch
    # layout / packing regressions while allowing f32 accumulation-order differences.
    np.testing.assert_allclose(np.asarray(feat), np.asarray(ref_feat), rtol=5e-3, atol=5e-4)
    np.testing.assert_allclose(np.asarray(uc), np.asarray(ref_uc), rtol=5e-3, atol=5e-4)
    print("KERNEL_OK")
</pallas_src>

<mosaic_0001>
module attributes {stable_mosaic.version = 11 : i64} {
  func.func @fused_kernel(%arg0: memref<3xf32, #tpu.memory_space<smem>>, %arg1: memref<5xf32, #tpu.memory_space<smem>>, %arg2: memref<512x36xbf16, #tpu.memory_space<vmem>>, %arg3: memref<36x128xbf16, #tpu.memory_space<vmem>>, %arg4: memref<128x128xf32, #tpu.memory_space<vmem>>, %arg5: memref<8x128xf32, #tpu.memory_space<vmem>>, %arg6: memref<2x128xf32, #tpu.memory_space<vmem>>) attributes {dimension_semantics = [], scalar_prefetch = 0 : i64, scratch_operands = 0 : i64, tpu.core_type = #tpu.core_type<tc>} {
    %c0 = arith.constant 0 : index
    %c0_0 = arith.constant 0 : index
    %0 = vector.load %arg2[%c0, %c0_0] : memref<512x36xbf16, #tpu.memory_space<vmem>>, vector<512x36xbf16>
    %c0_1 = arith.constant 0 : index
    %c0_2 = arith.constant 0 : index
    %1 = vector.load %arg3[%c0_1, %c0_2] : memref<36x128xbf16, #tpu.memory_space<vmem>>, vector<36x128xbf16>
    %cst = arith.constant dense<0.000000e+00> : vector<512x128xf32>
    %2 = tpu.matmul %0, %1, %cst {dimension_numbers = #tpu.dot_dimension_numbers<[1], [0], [0], [1], [0, 0, 1, 1], [], []>} : vector<512x36xbf16>, vector<36x128xbf16>, vector<512x128xf32> -> vector<512x128xf32>
    %c0_3 = arith.constant 0 : index
    %c0_4 = arith.constant 0 : index
    %3 = vector.load %arg5[%c0_3, %c0_4] : memref<8x128xf32, #tpu.memory_space<vmem>>, vector<1x128xf32>
    %4 = vector.broadcast %3 : vector<1x128xf32> to vector<512x128xf32>
    %5 = arith.addf %2, %4 : vector<512x128xf32>
    %cst_5 = arith.constant 0.000000e+00 : f32
    %6 = vector.broadcast %cst_5 : f32 to vector<512x128xf32>
    %7 = arith.maximumf %5, %6 : vector<512x128xf32>
    %8 = vector.extract_strided_slice %7 {offsets = [0, 0], sizes = [256, 128], strides = [1, 1]} : vector<512x128xf32> to vector<256x128xf32>
    %cst_6 = arith.constant dense<0.000000e+00> : vector<128xf32>
    %9 = vector.multi_reduction <add>, %8, %cst_6 [0] : vector<256x128xf32> to vector<128xf32>
    %10 = vector.shape_cast %9 : vector<128xf32> to vector<1x128xf32>
    %11 = vector.extract_strided_slice %7 {offsets = [256, 0], sizes = [256, 128], strides = [1, 1]} : vector<512x128xf32> to vector<256x128xf32>
    %cst_7 = arith.constant dense<0.000000e+00> : vector<128xf32>
    %12 = vector.multi_reduction <add>, %11, %cst_7 [0] : vector<256x128xf32> to vector<128xf32>
    %13 = vector.shape_cast %12 : vector<128xf32> to vector<1x128xf32>
    %14 = tpu.concatenate %10, %13 in 0 : vector<1x128xf32>, vector<1x128xf32> -> vector<2x128xf32>
    %cst_8 = arith.constant 3.906250e-03 : f32
    %15 = vector.broadcast %cst_8 : f32 to vector<2x128xf32>
    %16 = arith.mulf %14, %15 : vector<2x128xf32>
    %c0_9 = arith.constant 0 : index
    %c0_10 = arith.constant 0 : index
    %17 = vector.load %arg4[%c0_9, %c0_10] : memref<128x128xf32, #tpu.memory_space<vmem>>, vector<128x128xf32>
    %cst_11 = arith.constant dense<0.000000e+00> : vector<2x128xf32>
    %18 = tpu.matmul %16, %17, %cst_11 {dimension_numbers = #tpu.dot_dimension_numbers<[1], [0], [0], [1], [0, 0, 1, 1], [], []>} : vector<2x128xf32>, vector<128x128xf32>, vector<2x128xf32> -> vector<2x128xf32>
    %c1 = arith.constant 1 : index
    %c0_12 = arith.constant 0 : index
    %19 = vector.load %arg5[%c1, %c0_12] : memref<8x128xf32, #tpu.memory_space<vmem>>, vector<1x128xf32>
    %20 = vector.broadcast %19 : vector<1x128xf32> to vector<2x128xf32>
    %21 = arith.addf %18, %20 : vector<2x128xf32>
    %22 = arith.mulf %21, %21 : vector<2x128xf32>
    %cst_13 = arith.constant dense<0.000000e+00> : vector<2xf32>
    %23 = vector.multi_reduction <add>, %22, %cst_13 [1] : vector<2x128xf32> to vector<2xf32>
    %24 = vector.shape_cast %23 : vector<2xf32> to vector<2x1xf32>
    %25 = math.sqrt %24 : vector<2x1xf32>
    %c0_14 = arith.constant 0 : index
    %26 = memref.load %arg0[%c0_14] : memref<3xf32, #tpu.memory_space<smem>>
    %27 = vector.broadcast %26 : f32 to vector<2x1xf32>
    %28 = arith.subf %25, %27 : vector<2x1xf32>
    %c1_15 = arith.constant 1 : index
    %29 = memref.load %arg0[%c1_15] : memref<3xf32, #tpu.memory_space<smem>>
    %30 = vector.broadcast %29 : f32 to vector<2x1xf32>
    %31 = arith.mulf %28, %30 : vector<2x1xf32>
    %32 = arith.mulf %31, %31 : vector<2x1xf32>
    %c4 = arith.constant 4 : index
    %33 = memref.load %arg1[%c4] : memref<5xf32, #tpu.memory_space<smem>>
    %34 = vector.broadcast %33 : f32 to vector<2x1xf32>
    %35 = arith.mulf %34, %32 : vector<2x1xf32>
    %c3 = arith.constant 3 : index
    %36 = memref.load %arg1[%c3] : memref<5xf32, #tpu.memory_space<smem>>
    %37 = vector.broadcast %36 : f32 to vector<2x1xf32>
    %38 = arith.addf %35, %37 : vector<2x1xf32>
    %39 = arith.mulf %38, %32 : vector<2x1xf32>
    %c2 = arith.constant 2 : index
    %40 = memref.load %arg1[%c2] : memref<5xf32, #tpu.memory_space<smem>>
    %41 = vector.broadcast %40 : f32 to vector<2x1xf32>
    %42 = arith.addf %39, %41 : vector<2x1xf32>
    %43 = arith.mulf %42, %32 : vector<2x1xf32>
    %c1_16 = arith.constant 1 : index
    %44 = memref.load %arg1[%c1_16] : memref<5xf32, #tpu.memory_space<smem>>
    %45 = vector.broadcast %44 : f32 to vector<2x1xf32>
    %46 = arith.addf %43, %45 : vector<2x1xf32>
    %47 = arith.mulf %46, %32 : vector<2x1xf32>
    %c0_17 = arith.constant 0 : index
    %48 = memref.load %arg1[%c0_17] : memref<5xf32, #tpu.memory_space<smem>>
    %49 = vector.broadcast %48 : f32 to vector<2x1xf32>
    %50 = arith.addf %47, %49 : vector<2x1xf32>
    %51 = arith.mulf %31, %50 : vector<2x1xf32>
    %c2_18 = arith.constant 2 : index
    %52 = memref.load %arg0[%c2_18] : memref<3xf32, #tpu.memory_space<smem>>
    %53 = vector.broadcast %52 : f32 to vector<2x1xf32>
    %54 = arith.subf %51, %53 : vector<2x1xf32>
    %c2_19 = arith.constant 2 : index
    %c0_20 = arith.constant 0 : index
    %55 = vector.load %arg5[%c2_19, %c0_20] : memref<8x128xf32, #tpu.memory_space<vmem>>, vector<1x128xf32>
    %56 = vector.broadcast %55 : vector<1x128xf32> to vector<2x128xf32>
    %57 = arith.mulf %21, %56 : vector<2x128xf32>
    %c3_21 = arith.constant 3 : index
    %c0_22 = arith.constant 0 : index
    %58 = vector.load %arg5[%c3_21, %c0_22] : memref<8x128xf32, #tpu.memory_space<vmem>>, vector<1x128xf32>
    %59 = vector.broadcast %58 : vector<1x128xf32> to vector<2x128xf32>
    %60 = arith.addf %57, %59 : vector<2x128xf32>
    %61 = arith.mulf %60, %60 : vector<2x128xf32>
    %cst_23 = arith.constant dense<0.000000e+00> : vector<2xf32>
    %62 = vector.multi_reduction <add>, %61, %cst_23 [1] : vector<2x128xf32> to vector<2xf32>
    %63 = vector.shape_cast %62 : vector<2xf32> to vector<2x1xf32>
    %cst_24 = arith.constant 1.000000e-24 : f32
    %64 = vector.broadcast %cst_24 : f32 to vector<2x1xf32>
    %65 = arith.maximumf %63, %64 : vector<2x1xf32>
    %66 = math.rsqrt %65 : vector<2x1xf32>
    %67 = vector.broadcast %66 : vector<2x1xf32> to vector<2x128xf32>
    %68 = arith.mulf %60, %67 : vector<2x128xf32>
    %69 = vector.broadcast %25 : vector<2x1xf32> to vector<2x128xf32>
    %70 = arith.mulf %68, %69 : vector<2x128xf32>
    %71 = tpu.iota {dimensions = array<i32: 1>} : vector<2x128xi32>
    %c32_i32 = arith.constant 32 : i32
    %72 = vector.broadcast %c32_i32 : i32 to vector<2x128xi32>
    %73 = arith.cmpi eq, %71, %72 : vector<2x128xi32>
    %74 = vector.shape_cast %54 : vector<2x1xf32> to vector<2x1xf32>
    %75 = vector.broadcast %74 : vector<2x1xf32> to vector<2x128xf32>
    %76 = arith.select %73, %75, %70 : vector<2x128xi1>, vector<2x128xf32>
    %c0_25 = arith.constant 0 : index
    %c0_26 = arith.constant 0 : index
    %77 = vector.load %arg6[%c0_25, %c0_26] : memref<2x128xf32, #tpu.memory_space<vmem>>, vector<2x128xf32>
    tpu.vector_store %arg6[%c0_25, %c0_26], %76 {strides = array<i32>} : memref<2x128xf32, #tpu.memory_space<vmem>>, vector<2x128xf32>,
    return
  }
}

</mosaic_0001>

<bundles_post_ra>
// kernel: uc_tri_ct_forward.1
= control target key start
LH: loop header
LB: loop body
LE: loop exit
PB: predicated region body
PF: predicated region fallthrough
CT: control target
= control target key end

     0   :  { %11 = vsyncpa [#allocation3], 0  ;;  %s1680_s0 = inlined_call_operand.vmem [shape: f32[3], index: 0, kind: input, shape index: {}]   ;;  %s1681_s1 = inlined_call_operand.vmem [shape: f32[5], index: 1, kind: input, shape index: {}]   ;;  %s1682_s2 = inlined_call_operand.vmem [shape: bf16[512,36], index: 2, kind: input, shape index: {}]   ;;  %s1683_s3 = inlined_call_operand.vmem [shape: bf16[36,128], index: 3, kind: input, shape index: {}]   ;;  %s1684_s4 = inlined_call_operand.vmem [shape: f32[128,128], index: 4, kind: input, shape index: {}]   ;;  %s1685_s5 = inlined_call_operand.vmem [shape: f32[8,128], index: 5, kind: input, shape index: {}]   ;;  %s1686_s6 = inlined_call_operand.vmem [shape: f32[2,128], index: 6, kind: output, shape index: {}]  }
   0x1   :  { %s19_s23 = sshll.u32 %s1680_s0, 4  ;;  %s20_s23 = int_to_ptr.vmem [resolvable:$true] %s19_s23 }
   0x2   :  { %12 = vsyncpa [#allocation5], 0  ;;  %s29_s26 = sshll.u32 %s1681_s1, 4  ;;  %s1276_s27 = scalar_lea.vmem %s20_s23, 16  ;;  %s30_s26 = int_to_ptr.vmem [resolvable:$true] %s29_s26 }
   0x3   :  { %p1277_p0 = scmp.ne.s32.totalorder %s20_s23, %s1276_s27  ;;  %p1281_p1 = scmp.lt.s32.totalorder %s20_s23, %s20_s23 }
   0x4   :  { %p1282_p2 = scmp.lt.s32.totalorder %s1276_s27, %s1276_s27 }
   0x6   :  { %p1283_p3 = por %p1282_p2, %p1281_p1 }
   0x8   :  { %p1284_p4 = pnand %p1283_p3, %p1277_p0 }
   0xa   :  { %1287 = shalt.err (!%p1284_p4)
}
   0xb   :  { %s1304_s28 = smov [#allocation2]   ;;  %s1288_s29 = scalar_lea.vmem %s30_s26, 16 }
   0xc   :  { %22 = dma.vmem_to_smem %s20_s23, 16, %s1304_s28, [#allocation3]  }
   0xd   :  { %p1289_p5 = scmp.ne.s32.totalorder %s30_s26, %s1288_s29  ;;  %p1293_p6 = scmp.lt.s32.totalorder %s30_s26, %s30_s26 }
   0xe   :  { %p1294_p7 = scmp.lt.s32.totalorder %s1288_s29, %s1288_s29 }
  0x10   :  { %p1295_p8 = por %p1294_p7, %p1293_p6 }
  0x12   :  { %p1296_p9 = pnand %p1295_p8, %p1289_p5 }
  0x14   :  { %1299 = shalt.err (!%p1296_p9)
}
  0x15   :  { %s1305_s0 = smov [#allocation4]  }
  0x16   :  { %32 = dma.vmem_to_smem %s30_s26, 16, %s1305_s0, [#allocation5]  }
  0x17   :  { %1300 = dma.done.wait [#allocation3], 16  }
  0x18   :  { %1301 = vsyncadd [#allocation3], 4294967280 }
  0x19   :  { %1302 = dma.done.wait [#allocation5], 16  }
  0x1a   :  { %1303 = vsyncadd [#allocation5], 4294967280 }
  0x1b   :  { %47 = sfence }
  0x1c   :  { %v1237_v0 = vld [vmem:[%s1683_s3 + $0x10] ss:$0 sps:$4 sm:$0x33]   ;;  %vm395_vm0 = vcmask 1041408   ;;  %v1238_v1 = vld [vmem:[%s1683_s3 + $0x8] sm:$0xff]   ;;  %vm298_vm1 = vcmask 293888  }
  0x1d   :  { %1231 = vmatprep.subr.msk.bf16.mxu0 %vm395_vm0, %v1237_v0  ;;  %v397_v2 = vsel %vm395_vm0, %v1237_v0, 0  ;;  %1232 = vmatprep.subr.msk.bf16.mxu1 %vm395_vm0, %v1237_v0  ;;  %v1240_v3 = vld [vmem:[%s1682_s2] sm:$0xff]   ;;  %v1241_v5 = vld [vmem:[%s1682_s2 + $0x8] sm:$0xff]   ;;  %v1242_v6 = vld [vmem:[%s1682_s2 + $0x10] sm:$0xff]   ;;  %v1306_v36 = vmov 0.0   ;;  %vm1307_vm2 = vmmov 0  }
  0x1e   :  { %1121 = vmatpush3.bf16.msra.mxu0 %v397_v2  ;;  %1228 = vmatpush3.bf16.msra.mxu1 %v397_v2  ;;  %v1239_v4 = vld [vmem:[%s1683_s3] sm:$0xff]   ;;  %v1243_v7 = vld [vmem:[%s1682_s2 + $0x18] sm:$0xff]   ;;  %v1258_v9 = vld [vmem:[%s1682_s2 + $0x90] sm:$0xff]   ;;  %vm826_vm3 = vcmask 1040384   ;;  %s931_s0 = sld [smem:[#allocation2]] }
  0x1f   :  { %1122 = vmatprep.subr.bf16.mxu0 %v1238_v1  ;;  %1226 = vmatprep.subr.bf16.mxu1 %v1238_v1  ;;  %v1244_v8 = vld [vmem:[%s1682_s2 + $0x20] sm:$0xff]   ;;  %v1259_v10 = vld [vmem:[%s1682_s2 + $0x98] sm:$0xff]   ;;  %v1245_v12 = vld [vmem:[%s1682_s2 + $0x28] sm:$0xff]   ;;  %s1060_s1 = sld [smem:[#allocation2 + $0x1]] }
  0x20   :  { %1126 = vmatprep.mubr.msk.bf16.mxu0 %vm298_vm1, %v1240_v3  ;;  %1162 = vmatprep.mubr.msk.bf16.mxu1 %vm298_vm1, %v1258_v9  ;;  %v1260_v11 = vld [vmem:[%s1682_s2 + $0xa0] sm:$0xff]   ;;  %v1246_v13 = vld [vmem:[%s1682_s2 + $0x30] sm:$0xff]   ;;  %v1261_v14 = vld [vmem:[%s1682_s2 + $0xa8] sm:$0xff]   ;;  %s1061_s30 = sld [smem:[#allocation4 + $0x4]] }
  0x21   :  { %v1262_v15 = vld [vmem:[%s1682_s2 + $0xb0] sm:$0xff]   ;;  %v1247_v16 = vld [vmem:[%s1682_s2 + $0x38] sm:$0xff]   ;;  %v1248_v17 = vld [vmem:[%s1682_s2 + $0x40] sm:$0xff]   ;;  %s1062_s7 = sld [smem:[#allocation4 + $0x3]] }
  0x22   :  { %1123 = vmatpush3.bf16.msra.mxu0 %v1238_v1  ;;  %1229 = vmatpush3.bf16.msra.mxu1 %v1238_v1  ;;  %v1263_v18 = vld [vmem:[%s1682_s2 + $0xb8] sm:$0xff]   ;;  %v1264_v19 = vld [vmem:[%s1682_s2 + $0xc0] sm:$0xff]   ;;  %v1249_v20 = vld [vmem:[%s1682_s2 + $0x48] sm:$0xff]   ;;  %s1064_s8 = sld [smem:[#allocation4 + $0x1]] }
  0x23   :  { %1124 = vmatprep.subr.bf16.mxu0 %v1239_v4  ;;  %1227 = vmatprep.subr.bf16.mxu1 %v1239_v4  ;;  %v1250_v21 = vld [vmem:[%s1682_s2 + $0x50] sm:$0xff]   ;;  %v1265_v22 = vld [vmem:[%s1682_s2 + $0xc8] sm:$0xff]   ;;  %v1251_v24 = vld [vmem:[%s1682_s2 + $0x58] sm:$0xff]   ;;  %s953_s9 = sld [smem:[#allocation4]] }
  0x24   :  { %v1266_v23 = vld [vmem:[%s1682_s2 + $0xd0] sm:$0xff]   ;;  %v1252_v25 = vld [vmem:[%s1682_s2 + $0x60] sm:$0xff]   ;;  %v1267_v26 = vld [vmem:[%s1682_s2 + $0xd8] sm:$0xff]   ;;  %s1065_s10 = sld [smem:[#allocation2 + $0x2]] }
  0x25   :  { %v1268_v27 = vld [vmem:[%s1682_s2 + $0xe0] sm:$0xff]   ;;  %v1253_v28 = vld [vmem:[%s1682_s2 + $0x68] sm:$0xff]   ;;  %v1254_v29 = vld [vmem:[%s1682_s2 + $0x70] sm:$0xff]  }
  0x26   :  { %1125 = vmatpush3.bf16.msra.mxu0 %v1239_v4  ;;  %1230 = vmatpush3.bf16.msra.mxu1 %v1239_v4  ;;  %v1269_v30 = vld [vmem:[%s1682_s2 + $0xe8] sm:$0xff]   ;;  %v1270_v31 = vld [vmem:[%s1682_s2 + $0xf0] sm:$0xff]   ;;  %v1255_v32 = vld [vmem:[%s1682_s2 + $0x78] sm:$0xff]  }
  0x27   :  { %v1256_v33 = vld [vmem:[%s1682_s2 + $0x80] sm:$0xff]   ;;  %v1271_v34 = vld [vmem:[%s1682_s2 + $0xf8] sm:$0xff]   ;;  %v1257_v35 = vld [vmem:[%s1682_s2 + $0x88] sm:$0xff]   ;;  %1190 = vmatprep.subr.mxu1 %v1306_v36 }
  0x28   :  { %v844_v37 = vld [vmem:[%s1684_s4 + $0x78] sm:$0xff]  ;;  %v843_v38 = vld [vmem:[%s1684_s4 + $0x70] sm:$0xff]  ;;  %v842_v39 = vld [vmem:[%s1684_s4 + $0x68] sm:$0xff] }
  0x29   :  { %1127 = vmatmul.mubr.msk.bf16.vlgmr.msra.gmra.mxu0 %vm298_vm1, %v1241_v5  ;;  %1163 = vmatmul.mubr.msk.bf16.vlgmr.msra.gmra.mxu1 %vm298_vm1, %v1259_v10  ;;  %v841_v40 = vld [vmem:[%s1684_s4 + $0x60] sm:$0xff]  ;;  %v840_v41 = vld [vmem:[%s1684_s4 + $0x58] sm:$0xff]  ;;  %v839_v42 = vld [vmem:[%s1684_s4 + $0x50] sm:$0xff] }
  0x2a   :  { %1130 = vmatprep.mubr.msk.bf16.mxu0 %vm298_vm1, %v1242_v6  ;;  %1166 = vmatprep.mubr.msk.bf16.mxu1 %vm298_vm1, %v1260_v11  ;;  %v838_v44 = vld [vmem:[%s1684_s4 + $0x48] sm:$0xff]  ;;  %v1521_v46 = vld [vmem:[%s1685_s5] ss:$0 sm:$0xff]  ;;  %v836_v54 = vld [vmem:[%s1684_s4 + $0x38] sm:$0xff] }
  0x2b   :  { %1191 = vmatpush3.msra.mxu1 %v844_v37  ;;  %v837_v50 = vld [vmem:[%s1684_s4 + $0x40] sm:$0xff]  ;;  %v835_v59 = vld [vmem:[%s1684_s4 + $0x30] sm:$0xff]  ;;  %v834_v0 = vld [vmem:[%s1684_s4 + $0x28] sm:$0xff] }
  0x2c   :  { %1192 = vmatprep.subr.mxu1 %v1306_v36  ;;  %v833_v5 = vld [vmem:[%s1684_s4 + $0x20] sm:$0xff]  ;;  %v832_v11 = vld [vmem:[%s1684_s4 + $0x18] sm:$0xff] }
  0x2d   :  { %1193 = vmatpush3.msra.mxu1 %v843_v38 }
  0x2e   :  { %1194 = vmatprep.subr.mxu1 %v1306_v36 }
  0x2f   :  { %1195 = vmatpush3.msra.mxu1 %v842_v39 }
  0x30   :  { %1196 = vmatprep.subr.mxu1 %v1306_v36 }
  0x31   :  { %1131 = vmatmul.mubr.msk.bf16.gmra.mxu0 %vm298_vm1, %v1243_v7  ;;  %1167 = vmatmul.mubr.msk.bf16.gmra.mxu1 %vm298_vm1, %v1261_v14 }
  0x32   :  { %1134 = vmatprep.mubr.msk.bf16.mxu0 %vm298_vm1, %v1244_v8  ;;  %1170 = vmatprep.mubr.msk.bf16.mxu1 %vm298_vm1, %v1262_v15 }
  0x33   :  { %1197 = vmatpush3.msra.mxu1 %v841_v40 }
  0x34   :  { %1198 = vmatprep.subr.mxu1 %v1306_v36 }
  0x35   :  { %1199 = vmatpush3.msra.mxu1 %v840_v41 }
  0x36   :  { %1200 = vmatprep.subr.mxu1 %v1306_v36 }
  0x37   :  { %1201 = vmatpush3.msra.mxu1 %v839_v42 }
  0x38   :  { %1202 = vmatprep.subr.mxu1 %v1306_v36 }
  0x39   :  { %1135 = vmatmul.mubr.msk.bf16.gmra.mxu0 %vm298_vm1, %v1245_v12  ;;  %1171 = vmatmul.mubr.msk.bf16.gmra.mxu1 %vm298_vm1, %v1263_v18 }
  0x3a   :  { %1138 = vmatprep.mubr.msk.bf16.mxu0 %vm298_vm1, %v1246_v13  ;;  %1174 = vmatprep.mubr.msk.bf16.mxu1 %vm298_vm1, %v1264_v19 }
  0x3b   :  { %1203 = vmatpush3.msra.mxu1 %v838_v44 }
  0x3c   :  { %1204 = vmatprep.subr.mxu1 %v1306_v36 }
  0x3d   :  { %1205 = vmatpush3.msra.mxu1 %v837_v50 }
  0x3e   :  { %1206 = vmatprep.subr.mxu1 %v1306_v36 }
  0x3f   :  { %1207 = vmatpush3.msra.mxu1 %v836_v54 }
  0x40   :  { %1208 = vmatprep.subr.mxu1 %v1306_v36 }
  0x41   :  { %1139 = vmatmul.mubr.msk.bf16.gmra.mxu0 %vm298_vm1, %v1247_v16  ;;  %1175 = vmatmul.mubr.msk.bf16.gmra.mxu1 %vm298_vm1, %v1265_v22 }
  0x42   :  { %1142 = vmatprep.mubr.msk.bf16.mxu0 %vm298_vm1, %v1248_v17  ;;  %1178 = vmatprep.mubr.msk.bf16.mxu1 %vm298_vm1, %v1266_v23  ;;  %v831_v17 = vld [vmem:[%s1684_s4 + $0x10] sm:$0xff]  ;;  %v829_v23 = vld [vmem:[%s1684_s4] sm:$0xff] }
  0x43   :  { %1209 = vmatpush3.msra.mxu1 %v835_v59 }
  0x44   :  { %1210 = vmatprep.subr.mxu1 %v1306_v36 }
  0x45   :  { %1211 = vmatpush3.msra.mxu1 %v834_v0 }
  0x46   :  { %1212 = vmatprep.subr.mxu1 %v1306_v36 }
  0x47   :  { %1213 = vmatpush3.msra.mxu1 %v833_v5 }
  0x48   :  { %1214 = vmatprep.subr.mxu1 %v1306_v36 }
  0x49   :  { %1143 = vmatmul.mubr.msk.bf16.gmra.mxu0 %vm298_vm1, %v1249_v20  ;;  %1179 = vmatmul.mubr.msk.bf16.gmra.mxu1 %vm298_vm1, %v1267_v26 }
  0x4a   :  { %1146 = vmatprep.mubr.msk.bf16.mxu0 %vm298_vm1, %v1250_v21  ;;  %1182 = vmatprep.mubr.msk.bf16.mxu1 %vm298_vm1, %v1268_v27  ;;  %v830_v21 = vld [vmem:[%s1684_s4 + $0x8] sm:$0xff] }
  0x4b   :  { %1215 = vmatpush3.msra.mxu1 %v832_v11 }
  0x4c   :  { %1216 = vmatprep.subr.mxu1 %v1306_v36 }
  0x4d   :  { %1217 = vmatpush3.msra.mxu1 %v831_v17 }
  0x4e   :  { %1218 = vmatprep.subr.mxu1 %v1306_v36 }
  0x4f   :  { %1219 = vmatpush3.msra.mxu1 %v830_v21 }
  0x50   :  { %1220 = vmatprep.subr.mxu1 %v1306_v36 }
  0x51   :  { %1147 = vmatmul.mubr.msk.bf16.gmra.mxu0 %vm298_vm1, %v1251_v24  ;;  %1183 = vmatmul.mubr.msk.bf16.gmra.mxu1 %vm298_vm1, %v1269_v30 }
  0x52   :  { %1150 = vmatprep.mubr.msk.bf16.mxu0 %vm298_vm1, %v1252_v25  ;;  %1186 = vmatprep.mubr.msk.bf16.mxu1 %vm298_vm1, %v1270_v31 }
  0x53   :  { %1221 = vmatpush3.msra.mxu1 %v829_v23 }
  0x59   :  { %1151 = vmatmul.mubr.msk.bf16.gmra.mxu0 %vm298_vm1, %v1253_v28  ;;  %1187 = vmatmul.mubr.msk.bf16.gmra.mxu1 %vm298_vm1, %v1271_v34 }
  0x5a   :  { %1154 = vmatprep.mubr.msk.bf16.mxu0 %vm298_vm1, %v1254_v29  ;;  %1222 = vmatprep.mubr.msk.f32.mxu1 %vm1307_vm2, %v1306_v36 }
  0x61   :  { %1155 = vmatmul.mubr.msk.bf16.gmra.mxu0 %vm298_vm1, %v1255_v32 }
  0x62   :  { %1158 = vmatprep.mubr.msk.bf16.mxu0 %vm298_vm1, %v1256_v33 }
  0x69   :  { %1159 = vmatmul.mubr.msk.bf16.gmra.mxu0 %vm298_vm1, %v1257_v35 }
  0xe9   :  { %v1128_v43 = vpop.f32.mrf.mxu0  ;;  %v1543_v4 = vpop.f32.mrf.mxu1 }
  0xea   :  { %v442_v51 = vadd.f32 %v1128_v43, %v1521_v46 }
  0xeb   :  { %v433_v45 = vpop.f32.mrf.mxu0  ;;  %v1556_v16 = vpop.f32.mrf.mxu1 }
  0xec   :  { %v434_v48 = vadd.f32 %v1521_v46, %v433_v45  ;;  %v690_v60 = vmax.f32 %v442_v51, 0.0 }
  0xed   :  { %v1129_v47 = vpop.f32.mrf.mxu0  ;;  %v1571_v27 = vpop.f32.mrf.mxu1 }
  0xee   :  { %v688_v55 = vmax.f32 %v434_v48, 0.0  ;;  %v445_v56 = vadd.f32 %v1129_v47, %v1521_v46 }
  0xef   :  { %v436_v49 = vpop.f32.mrf.mxu0  ;;  %v1577_v38 = vpop.f32.mrf.mxu1 }
  0xf0   :  { %v437_v52 = vadd.f32 %v1521_v46, %v436_v49  ;;  %v691_v1 = vmax.f32 %v445_v56, 0.0 }
  0xf1   :  { %v1132_v53 = vpop.f32.mrf.mxu0  ;;  %v1580_v45 = vpop.f32.mrf.mxu1 }
  0xf2   :  { %v689_v57 = vmax.f32 %v437_v52, 0.0  ;;  %v458_v6 = vadd.f32 %v1132_v53, %v1521_v46 }
  0xf3   :  { %v449_v58 = vpop.f32.mrf.mxu0  ;;  %v1585_v56 = vpop.f32.mrf.mxu1 }
  0xf4   :  { %v752_v61 = vadd.f32 %v689_v57, %v688_v55  ;;  %v450_v62 = vadd.f32 %v1521_v46, %v449_v58  ;;  %v694_v18 = vmax.f32 %v458_v6, 0.0 }
  0xf5   :  { %v1133_v63 = vpop.f32.mrf.mxu0  ;;  %v1588_v0 = vpop.f32.mrf.mxu1 }
  0xf6   :  { %v753_v2 = vadd.f32 %v752_v61, %v690_v60  ;;  %v692_v7 = vmax.f32 %v450_v62, 0.0  ;;  %v461_v13 = vadd.f32 %v1133_v63, %v1521_v46 }
  0xf7   :  { %v452_v3 = vpop.f32.mrf.mxu0  ;;  %v1593_v11 = vpop.f32.mrf.mxu1 }
  0xf8   :  { %v754_v8 = vadd.f32 %v753_v2, %v691_v1  ;;  %v453_v9 = vadd.f32 %v1521_v46, %v452_v3  ;;  %v695_v24 = vmax.f32 %v461_v13, 0.0 }
  0xf9   :  { %v1136_v10 = vpop.f32.mrf.mxu0 }
  0xfa   :  { %v755_v12 = vadd.f32 %v754_v8, %v692_v7  ;;  %v693_v14 = vmax.f32 %v453_v9, 0.0  ;;  %v474_v28 = vadd.f32 %v1136_v10, %v1521_v46 }
  0xfb   :  { %v465_v15 = vpop.f32.mrf.mxu0 }
  0xfc   :  { %v756_v19 = vadd.f32 %v755_v12, %v693_v14  ;;  %v466_v20 = vadd.f32 %v1521_v46, %v465_v15  ;;  %v698_v39 = vmax.f32 %v474_v28, 0.0 }
  0xfd   :  { %v1137_v22 = vpop.f32.mrf.mxu0 }
  0xfe   :  { %v757_v25 = vadd.f32 %v756_v19, %v694_v18  ;;  %v696_v29 = vmax.f32 %v466_v20, 0.0  ;;  %v477_v34 = vadd.f32 %v1137_v22, %v1521_v46  ;;  %v1596_v20 = vpop.f32.mrf.mxu1 }
  0xff   :  { %v468_v26 = vpop.f32.mrf.mxu0 }
 0x100   :  { %v758_v30 = vadd.f32 %v757_v25, %v695_v24  ;;  %v469_v31 = vadd.f32 %v1521_v46, %v468_v26  ;;  %v699_v42 = vmax.f32 %v477_v34, 0.0 }
 0x101   :  { %v1140_v32 = vpop.f32.mrf.mxu0 }
 0x102   :  { %v759_v33 = vadd.f32 %v758_v30, %v696_v29  ;;  %v697_v35 = vmax.f32 %v469_v31, 0.0  ;;  %v490_v47 = vadd.f32 %v1140_v32, %v1521_v46  ;;  %v1601_v31 = vpop.f32.mrf.mxu1 }
 0x103   :  { %v481_v37 = vpop.f32.mrf.mxu0 }
 0x104   :  { %v760_v40 = vadd.f32 %v759_v33, %v697_v35  ;;  %v482_v41 = vadd.f32 %v1521_v46, %v481_v37  ;;  %v702_v57 = vmax.f32 %v490_v47, 0.0 }
 0x105   :  { %v1141_v36 = vpop.f32.mrf.mxu0 }
 0x106   :  { %v761_v43 = vadd.f32 %v760_v40, %v698_v39  ;;  %v700_v48 = vmax.f32 %v482_v41, 0.0  ;;  %v493_v53 = vadd.f32 %v1141_v36, %v1521_v46  ;;  %v1604_v41 = vpop.f32.mrf.mxu1 }
 0x107   :  { %v484_v44 = vpop.f32.mrf.mxu0 }
 0x108   :  { %v762_v49 = vadd.f32 %v761_v43, %v699_v42  ;;  %v485_v50 = vadd.f32 %v1521_v46, %v484_v44  ;;  %v703_v61 = vmax.f32 %v493_v53, 0.0 }
 0x109   :  { %v1144_v51 = vpop.f32.mrf.mxu0 }
 0x10a   :  { %v763_v52 = vadd.f32 %v762_v49, %v700_v48  ;;  %v701_v54 = vmax.f32 %v485_v50, 0.0  ;;  %v506_v1 = vadd.f32 %v1144_v51, %v1521_v46 }
 0x10b   :  { %v497_v55 = vpop.f32.mrf.mxu0 }
 0x10c   :  { %v764_v58 = vadd.f32 %v763_v52, %v701_v54  ;;  %v498_v59 = vadd.f32 %v1521_v46, %v497_v55  ;;  %v706_v12 = vmax.f32 %v506_v1, 0.0  ;;  %v1609_v52 = vpop.f32.mrf.mxu1 }
 0x10d   :  { %v1145_v60 = vpop.f32.mrf.mxu0 }
 0x10e   :  { %v765_v62 = vadd.f32 %v764_v58, %v702_v57  ;;  %v704_v2 = vmax.f32 %v498_v59, 0.0  ;;  %v509_v8 = vadd.f32 %v1145_v60, %v1521_v46 }
 0x10f   :  { %v500_v63 = vpop.f32.mrf.mxu0 }
 0x110   :  { %v766_v3 = vadd.f32 %v765_v62, %v703_v61  ;;  %v501_v5 = vadd.f32 %v1521_v46, %v500_v63  ;;  %v707_v17 = vmax.f32 %v509_v8, 0.0  ;;  %v1612_v61 = vpop.f32.mrf.mxu1 }
 0x111   :  { %v1148_v6 = vpop.f32.mrf.mxu0 }
 0x112   :  { %v767_v7 = vadd.f32 %v766_v3, %v704_v2  ;;  %v705_v9 = vmax.f32 %v501_v5, 0.0  ;;  %v522_v21 = vadd.f32 %v1148_v6, %v1521_v46 }
 0x113   :  { %v513_v10 = vpop.f32.mrf.mxu0 }
 0x114   :  { %v768_v13 = vadd.f32 %v767_v7, %v705_v9  ;;  %v514_v14 = vadd.f32 %v1521_v46, %v513_v10  ;;  %v710_v32 = vmax.f32 %v522_v21, 0.0  ;;  %v625_v9 = vpop.f32.mrf.mxu1 }
 0x115   :  { %v1149_v15 = vpop.f32.mrf.mxu0 }
 0x116   :  { %v769_v18 = vadd.f32 %v768_v13, %v706_v12  ;;  %v708_v22 = vmax.f32 %v514_v14, 0.0  ;;  %v525_v28 = vadd.f32 %v1149_v15, %v1521_v46 }
 0x117   :  { %v516_v19 = vpop.f32.mrf.mxu0 }
 0x118   :  { %v770_v23 = vadd.f32 %v769_v18, %v707_v17  ;;  %v517_v24 = vadd.f32 %v1521_v46, %v516_v19  ;;  %v711_v37 = vmax.f32 %v525_v28, 0.0  ;;  %v1177_v19 = vpop.f32.mrf.mxu1 }
 0x119   :  { %v1152_v25 = vpop.f32.mrf.mxu0 }
 0x11a   :  { %v771_v26 = vadd.f32 %v770_v23, %v708_v22  ;;  %v709_v29 = vmax.f32 %v517_v24, 0.0  ;;  %v538_v36 = vadd.f32 %v1152_v25, %v1521_v46  ;;  %v628_v28 = vpop.f32.mrf.mxu1 }
 0x11b   :  { %v529_v30 = vpop.f32.mrf.mxu0 }
 0x11c   :  { %v772_v33 = vadd.f32 %v771_v26, %v709_v29  ;;  %v530_v34 = vadd.f32 %v1521_v46, %v529_v30  ;;  %v714_v53 = vmax.f32 %v538_v36, 0.0  ;;  %v578_v30 = vadd.f32 %v1521_v46, %v1556_v16 }
 0x11d   :  { %v1153_v35 = vpop.f32.mrf.mxu0 }
 0x11e   :  { %v773_v39 = vadd.f32 %v772_v33, %v710_v32  ;;  %v712_v42 = vmax.f32 %v530_v34, 0.0  ;;  %v541_v49 = vadd.f32 %v1153_v35, %v1521_v46  ;;  %v581_v35 = vadd.f32 %v1521_v46, %v1577_v38 }
 0x11f   :  { %v532_v40 = vpop.f32.mrf.mxu0  ;;  %v597_v38 = vadd.f32 %v1521_v46, %v1593_v11  ;;  %v613_v11 = vadd.f32 %v1521_v46, %v1609_v52  ;;  %v629_v52 = vadd.f32 %v1521_v46, %v628_v28 }
 0x120   :  { %v774_v43 = vadd.f32 %v773_v39, %v711_v37  ;;  %v533_v44 = vadd.f32 %v1521_v46, %v532_v40  ;;  %v715_v58 = vmax.f32 %v541_v49, 0.0  ;;  %v1180_v37 = vpop.f32.mrf.mxu1  ;;  %v586_v39 = vadd.f32 %v1543_v4, %v1521_v46 }
 0x121   :  { %v1156_v47 = vpop.f32.mrf.mxu0  ;;  %v724_v40 = vmax.f32 %v578_v30, 0.0  ;;  %v594_v49 = vadd.f32 %v1521_v46, %v1585_v56  ;;  %v602_v4 = vadd.f32 %v1580_v45, %v1521_v46  ;;  %v610_v56 = vadd.f32 %v1521_v46, %v1601_v31 }
 0x122   :  { %v775_v48 = vadd.f32 %v774_v43, %v712_v42  ;;  %v713_v50 = vmax.f32 %v533_v44, 0.0  ;;  %v554_v62 = vadd.f32 %v1156_v47, %v1521_v46  ;;  %v589_v42 = vadd.f32 %v1571_v27, %v1521_v46  ;;  %v641_v47 = vpop.f32.mrf.mxu1 }
 0x123   :  { %v545_v51 = vpop.f32.mrf.mxu0  ;;  %v725_v43 = vmax.f32 %v581_v35, 0.0  ;;  %v618_v45 = vadd.f32 %v1596_v20, %v1521_v46  ;;  %v626_v31 = vadd.f32 %v1521_v46, %v625_v9  ;;  %v634_v20 = vadd.f32 %v1612_v61, %v1521_v46 }
 0x124   :  { %v776_v54 = vadd.f32 %v775_v48, %v713_v50  ;;  %v546_v55 = vadd.f32 %v1521_v46, %v545_v51  ;;  %v718_v10 = vmax.f32 %v554_v62, 0.0  ;;  %v726_v48 = vmax.f32 %v586_v39, 0.0 }
 0x125   :  { %v1157_v57 = vpop.f32.mrf.mxu0  ;;  %v727_v50 = vmax.f32 %v589_v42, 0.0 }
 0x126   :  { %v777_v59 = vadd.f32 %v776_v54, %v714_v53  ;;  %v716_v63 = vmax.f32 %v546_v55, 0.0  ;;  %v557_v6 = vadd.f32 %v1157_v57, %v1521_v46  ;;  %v1181_v53 = vpop.f32.mrf.mxu1  ;;  %v728_v54 = vmax.f32 %v594_v49, 0.0 }
 0x127   :  { %v548_v60 = vpop.f32.mrf.mxu0  ;;  %v605_v57 = vadd.f32 %v1588_v0, %v1521_v46  ;;  %v621_v0 = vadd.f32 %v1604_v41, %v1521_v46  ;;  %v737_v41 = vmax.f32 %v629_v52, 0.0  ;;  %v653_v39 = vadd.f32 %v1181_v53, %v1521_v46 }
 0x128   :  { %v778_v1 = vadd.f32 %v777_v59, %v715_v58  ;;  %v549_v2 = vadd.f32 %v1521_v46, %v548_v60  ;;  %v719_v14 = vmax.f32 %v557_v6, 0.0  ;;  %v729_v58 = vmax.f32 %v597_v38, 0.0  ;;  %v644_v59 = vpop.f32.mrf.mxu1 }
 0x129   :  { %v1160_v3 = vpop.f32.mrf.mxu0  ;;  %v730_v60 = vmax.f32 %v602_v4, 0.0 }
 0x12a   :  { %v779_v5 = vadd.f32 %v778_v1, %v716_v63  ;;  %v717_v7 = vmax.f32 %v549_v2, 0.0  ;;  %v570_v22 = vadd.f32 %v1160_v3, %v1521_v46  ;;  %v731_v63 = vmax.f32 %v605_v57, 0.0  ;;  %v1184_v2 = vpop.f32.mrf.mxu1 }
 0x12b   :  { %v561_v8 = vpop.f32.mrf.mxu0  ;;  %v732_v3 = vmax.f32 %v610_v56, 0.0  ;;  %v666_v49 = vadd.f32 %v1184_v2, %v1521_v46 }
 0x12c   :  { %v780_v12 = vadd.f32 %v779_v5, %v717_v7  ;;  %v562_v17 = vadd.f32 %v1521_v46, %v561_v8  ;;  %v722_v29 = vmax.f32 %v570_v22, 0.0  ;;  %v733_v7 = vmax.f32 %v613_v11, 0.0  ;;  %v657_v8 = vpop.f32.mrf.mxu1 }
 0x12d   :  { %v1161_v13 = vpop.f32.mrf.mxu0 }
 0x12e   :  { %v781_v15 = vadd.f32 %v780_v12, %v718_v10  ;;  %v720_v24 = vmax.f32 %v562_v17, 0.0  ;;  %v573_v25 = vadd.f32 %v1161_v13, %v1521_v46  ;;  %v734_v10 = vmax.f32 %v618_v45, 0.0 }
 0x12f   :  { %v564_v18 = vpop.f32.mrf.mxu0  ;;  %v735_v13 = vmax.f32 %v621_v0, 0.0  ;;  %v736_v17 = vmax.f32 %v626_v31, 0.0 }
 0x130   :  { %v1618_v21 = vadd.f32 %v781_v15, %v719_v14  ;;  %v565_v23 = vadd.f32 %v1521_v46, %v564_v18  ;;  %v723_v33 = vmax.f32 %v573_v25, 0.0  ;;  %v1185_v15 = vpop.f32.mrf.mxu1  ;;  %v738_v25 = vmax.f32 %v634_v20, 0.0 }
 0x131   :  { %v669_v38 = vadd.f32 %v1185_v15, %v1521_v46 }
 0x132   :  { %v721_v26 = vmax.f32 %v565_v23, 0.0  ;;  %v637_v23 = vadd.f32 %v1177_v19, %v1521_v46 }
 0x133   :  { %v747_v57 = vmax.f32 %v669_v38, 0.0 }
 0x134   :  { %v789_v32 = vadd.f32 %v721_v26, %v720_v24  ;;  %v660_v24 = vpop.f32.mrf.mxu1  ;;  %v739_v9 = vmax.f32 %v637_v23, 0.0  ;;  %v1066_v23 = vld [vmem:[%s1685_s5 + $0x2] ss:$0 sm:$0xff] }
 0x136   :  { %v790_v34 = vadd.f32 %v789_v32, %v722_v29  ;;  %v642_v29 = vadd.f32 %v1521_v46, %v641_v47  ;;  %v645_v32 = vadd.f32 %v1521_v46, %v644_v59  ;;  %v1188_v28 = vpop.f32.mrf.mxu1 }
 0x138   :  { %v791_v36 = vadd.f32 %v790_v34, %v723_v33  ;;  %v650_v33 = vadd.f32 %v1180_v37, %v1521_v46  ;;  %v740_v34 = vmax.f32 %v642_v29, 0.0  ;;  %v673_v19 = vpop.f32.mrf.mxu1 }
 0x13a   :  { %v792_v44 = vadd.f32 %v791_v36, %v724_v40  ;;  %v741_v40 = vmax.f32 %v645_v32, 0.0  ;;  %v742_v36 = vmax.f32 %v650_v33, 0.0 }
 0x13c   :  { %v793_v16 = vadd.f32 %v792_v44, %v725_v43  ;;  %v658_v43 = vadd.f32 %v1521_v46, %v657_v8  ;;  %v743_v44 = vmax.f32 %v653_v39, 0.0 }
 0x13e   :  { %v794_v51 = vadd.f32 %v793_v16, %v726_v48  ;;  %v661_v48 = vadd.f32 %v1521_v46, %v660_v24  ;;  %v1189_v16 = vpop.f32.mrf.mxu1 }
 0x13f   :  { %v685_v11 = vadd.f32 %v1189_v16, %v1521_v46 }
 0x140   :  { %v795_v55 = vadd.f32 %v794_v51, %v727_v50  ;;  %v744_v50 = vmax.f32 %v658_v43, 0.0  ;;  %v745_v4 = vmax.f32 %v661_v48, 0.0  ;;  %v676_v53 = vpop.f32.mrf.mxu1  ;;  %v939_v48 = vstv %s1061_s30 }
 0x141   :  { %v677_v59 = vadd.f32 %v1521_v46, %v676_v53  ;;  %v950_v53 = vstv %s1064_s8 }
 0x142   :  { %v796_v27 = vadd.f32 %v795_v55, %v728_v54  ;;  %v746_v54 = vmax.f32 %v666_v49, 0.0  ;;  %v942_v49 = vstv %s1062_s7 }
 0x143   :  { %v749_v2 = vmax.f32 %v677_v59, 0.0 }
 0x144   :  { %v797_v62 = vadd.f32 %v796_v27, %v729_v58  ;;  %v674_v27 = vadd.f32 %v1521_v46, %v673_v19 }
 0x146   :  { %v798_v1 = vadd.f32 %v797_v62, %v730_v60  ;;  %v783_v60 = vrot.slane %v1618_v21, 4  ;;  %v682_v62 = vadd.f32 %v1188_v28, %v1521_v46  ;;  %v748_v56 = vmax.f32 %v674_v27, 0.0 }
 0x148   :  { %v799_v5 = vadd.f32 %v798_v1, %v731_v63  ;;  %v784_v45 = vadd.f32 %v783_v60, %v1618_v21  ;;  %v1059_v21 = vld [vmem:[%s1685_s5 + $0x1] ss:$0 sm:$0xff] }
 0x14a   :  { %v800_v6 = vadd.f32 %v799_v5, %v732_v3  ;;  %v750_v3 = vmax.f32 %v682_v62, 0.0 }
 0x14c   :  { %v801_v12 = vadd.f32 %v800_v6, %v733_v7  ;;  %v751_v6 = vmax.f32 %v685_v11, 0.0  ;;  %v785_v7 = vrot.slane %v784_v45, 2 }
 0x14e   :  { %v802_v14 = vadd.f32 %v801_v12, %v734_v10  ;;  %v786_v12 = vadd.f32 %v785_v7, %v784_v45 }
 0x150   :  { %v803_v18 = vadd.f32 %v802_v14, %v735_v13  ;;  %v787_v14 = vrot.slane %v786_v12, 1 }
 0x152   :  { %v804_v22 = vadd.f32 %v803_v18, %v736_v17  ;;  %v788_v20 = vadd.f32 %v787_v14, %v786_v12 }
 0x154   :  { %v805_v26 = vadd.f32 %v804_v22, %v737_v41 }
 0x156   :  { %v806_v30 = vadd.f32 %v805_v26, %v738_v25  ;;  %v1067_v25 = vld [vmem:[%s1685_s5 + $0x3] ss:$0 sm:$0xff]  ;;  %s1063_s5 = sld [smem:[#allocation4 + $0x2]] }
 0x158   :  { %v807_v61 = vadd.f32 %v806_v30, %v739_v9 }
 0x15a   :  { %v808_v35 = vadd.f32 %v807_v61, %v740_v34 }
 0x15c   :  { %v809_v42 = vadd.f32 %v808_v35, %v741_v40  ;;  %v932_v35 = vstv %s931_s0 }
 0x15e   :  { %v810_v47 = vadd.f32 %v809_v42, %v742_v36  ;;  %v935_v36 = vstv %s1060_s1 }
 0x160   :  { %v811_v37 = vadd.f32 %v810_v47, %v743_v44 }
 0x162   :  { %v812_v51 = vadd.f32 %v811_v37, %v744_v50 }
 0x164   :  { %v813_v55 = vadd.f32 %v812_v51, %v745_v4  ;;  %v946_v51 = vstv %s1063_s5 }
 0x166   :  { %v814_v58 = vadd.f32 %v813_v55, %v746_v54  ;;  %v980_v55 = vlaneseq }
 0x168   :  { %v815_v63 = vadd.f32 %v814_v58, %v747_v57  ;;  %v954_v58 = vstv %s953_s9  ;;  %v981_v60 = vand.u32 127, %v980_v55 }
 0x16a   :  { %v816_v1 = vadd.f32 %v815_v63, %v748_v56  ;;  %v958_v63 = vstv %s1065_s10  ;;  %vm982_vm6 = vcmp.eq.s32.totalorder %v981_v60, 32 }
 0x16c   :  { %v817_v5 = vadd.f32 %v816_v1, %v749_v2 }
 0x16e   :  { %v818_v0 = vadd.f32 %v817_v5, %v750_v3 }
 0x170   :  { %v819_v8 = vadd.f32 %v818_v0, %v751_v6 }
 0x172   :  { %v820_v10 = vrot.slane %v819_v8, 4 }
 0x174   :  { %v821_v31 = vadd.f32 %v820_v10, %v819_v8 }
 0x176   :  { %v822_v13 = vrot.slane %v821_v31, 2 }
 0x178   :  { %v823_v52 = vadd.f32 %v822_v13, %v821_v31 }
 0x17a   :  { %v824_v15 = vrot.slane %v823_v52, 1 }
 0x17c   :  { %v825_v17 = vadd.f32 %v824_v15, %v823_v52 }
 0x17e   :  { %v827_v46 = vsel %vm826_vm3, %v788_v20, %v825_v17 }
 0x17f   :  { %v828_v18 = vmul.f32 0.00390625, %v827_v46 }
 0x181   :  { %1223 = vmatmul.mubr.f32.vlgmr.msra.gmra.mxu1 %v828_v18 }
 0x241   :  { %v916_v22 = vpop.f32.mrf.mxu1 }
 0x242   :  { %v917_v41 = vadd.f32 %v1059_v21, %v916_v22 }
 0x243   :  { %v1224_v24 = vpop.f32.mrf.mxu1 }
 0x244   :  { %v965_v26 = vmul.f32 %v1066_v23, %v917_v41  ;;  %v920_v29 = vmul.f32 %v917_v41, %v917_v41 }
 0x246   :  { %v921_v9 = vsel %vm395_vm0, %v920_v29, 0.0  ;;  %v971_v30 = vadd.f32 %v1067_v25, %v965_v26 }
 0x247   :  { %922 = vadd.xlane.f32.xlu0 %v921_v9 }
 0x248   :  { %v972_v32 = vmul.f32 %v971_v30, %v971_v30 }
 0x24a   :  { %v973_v28 = vsel %vm395_vm0, %v972_v32, 0.0 }
 0x24b   :  { %974 = vadd.xlane.f32.xlu0 %v973_v28 }
 0x2d0   :  { %v923_v33 = vpop.xlane.xlu0 %922 }
 0x2d1   :  { %1272 = vrsqrt.f32 %v923_v33  ;;  %vm926_vm4 = vcmp.eq.f32.partialorder %v923_v33, inf  ;;  %v929_v39 = vand.u32 2147483648, %v923_v33  ;;  %vm928_vm5 = vcmp.eq.f32.partialorder %v923_v33, 0.0 }
 0x2d4   :  { %v975_v40 = vpop.xlane.xlu0 %974 }
 0x2d5   :  { %v976_v44 = vmax.f32 %v975_v40, 1e-24 }
 0x2d7   :  { %1274 = vrsqrt.f32 %v976_v44 }
 0x2de   :  { %v1273_v34 = vpop.eup %1272 }
 0x2df   :  { %v925_v61 = vmul.f32 %v1273_v34, %v923_v33 }
 0x2e1   :  { %v927_v19 = vsel %vm926_vm4, %v923_v33, %v925_v61 }
 0x2e2   :  { %v930_v42 = vsel %vm928_vm5, %v929_v39, %v927_v19 }
 0x2e3   :  { %v933_v43 = vsub.f32 %v930_v42, %v932_v35 }
 0x2e4   :  { %v1275_v57 = vpop.eup %1274 }
 0x2e5   :  { %v936_v47 = vmul.f32 %v935_v36, %v933_v43  ;;  %v978_v56 = vmul.f32 %v1275_v57, %v971_v30 }
 0x2e7   :  { %v937_v16 = vmul.f32 %v936_v47, %v936_v47  ;;  %v979_v2 = vmul.f32 %v978_v56, %v930_v42 }
 0x2e9   :  { %v940_v50 = vmul.f32 %v939_v48, %v937_v16 }
 0x2eb   :  { %v943_v37 = vadd.f32 %v942_v49, %v940_v50 }
 0x2ed   :  { %v944_v38 = vmul.f32 %v943_v37, %v937_v16 }
 0x2ef   :  { %v947_v4 = vadd.f32 %v946_v51, %v944_v38 }
 0x2f1   :  { %v948_v54 = vmul.f32 %v947_v4, %v937_v16 }
 0x2f3   :  { %v951_v27 = vadd.f32 %v950_v53, %v948_v54 }
 0x2f5   :  { %v952_v59 = vmul.f32 %v951_v27, %v937_v16 }
 0x2f7   :  { %v955_v62 = vadd.f32 %v954_v58, %v952_v59 }
 0x2f9   :  { %v956_v1 = vmul.f32 %v955_v62, %v936_v47 }
 0x2fb   :  { %v959_v11 = vsub.f32 %v956_v1, %v958_v63 }
 0x2fd   :  { %v983_v45 = vsel %vm982_vm6, %v959_v11, %v979_v2 }
 0x2fe   :  { %984 = vst [vmem:[%s1686_s6] sm:$0x3] %v983_v45 }
 0x2ff   :  { %989 = vsyncpa [#allocation3], 1 }
 0x300   :  { %990 = vsyncpa [#allocation5], 1 }

</bundles_post_ra>
